<compile_context>
chip_gen: v7x
topology: tpu7x:2x2x1
jax: 0.10.0
libtpu: 0.0.40
codegen_flags: <defaults>
</compile_context>

<pallas_src>
import functools

import jax
import jax.numpy as jnp
from jax import lax
from jax.experimental import pallas as pl
from jax.experimental.pallas import tpu as pltpu


# --------------------------------------------------------------------------- #
# Hash head: y = tanh(scale * (feat @ W.T + b))                               #
# --------------------------------------------------------------------------- #
def _hash_head_kernel(f_ref, w_ref, b_ref, o_ref, *, scale):
    z = lax.dot_general(
        f_ref[...], w_ref[...],
        dimension_numbers=(((1,), (1,)), ((), ())),   # feat @ W.T without transposing W
        preferred_element_type=jnp.float32)
    o_ref[...] = jnp.tanh(scale * (z + b_ref[...])).astype(o_ref.dtype)


def hash_head(feat, w, b, scale=1.0):
    """Forward pass of HashNetRes50's hash layer + tanh activation."""
    batch = feat.shape[0]
    n_bit = w.shape[0]
    kernel = functools.partial(_hash_head_kernel, scale=float(scale))
    return pl.pallas_call(
        kernel,
        out_shape=jax.ShapeDtypeStruct((batch, n_bit), jnp.float32),
        in_specs=[
            pl.BlockSpec(memory_space=pltpu.VMEM),
            pl.BlockSpec(memory_space=pltpu.VMEM),
            pl.BlockSpec(memory_space=pltpu.VMEM),
        ],
        out_specs=pl.BlockSpec(memory_space=pltpu.VMEM),
    )(feat, w, b.reshape(1, n_bit))


# --------------------------------------------------------------------------- #
# HashNet pairwise loss, tiled over the (half, half) pair matrix              #
# --------------------------------------------------------------------------- #
def _device_defaults():
    """Per-generation pair-tile target and VMEM cap (smaller tiles on v7x)."""
    try:
        kind = jax.devices()[0].device_kind.lower()
    except Exception:
        kind = ""
    if "v7" in kind:
        return 512, 48 * 1024 * 1024        # 64 MiB physical VMEM, 2 TCs/chip
    return 1024, 96 * 1024 * 1024            # v5e / v6e: 128 MiB physical VMEM


def _pick_tiles(half, target):
    """Row tile (sublane side) and column tile (lane side) that divide `half` exactly."""
    t_i = half
    start = min(target, half)
    start -= start % 8
    for cand in range(start, 7, -8):          # multiples of 8 (sublane granularity)
        if half % cand == 0:
            t_i = cand
            break
    t_j = half                                # lane side: multiple of 128, else whole half
    start = min(target, half)
    start -= start % 128
    for cand in range(start, 127, -128):
        if half % cand == 0:
            t_j = cand
            break
    return t_i, t_j


def _hash_loss_kernel(x1_ref, x2_ref, lab_i_ref, lab_j_ref, num_ref, den_ref, *,
                      sigmoid_param, l_threshold, class_num):
    j = pl.program_id(1)

    @pl.when(j == 0)
    def _init():
        num_ref[...] = jnp.zeros_like(num_ref)
        den_ref[...] = jnp.zeros_like(den_ref)

    # dot_product = sigmoid_param * (x1 @ x2.T); contraction expressed directly so the
    # x2 tile is consumed in its natural (t_j, hash_bit) layout and the MXU accumulates
    # in f32 regardless of the input dtype (f32 or bf16 — no explicit upcast).
    dot = sigmoid_param * lax.dot_general(
        x1_ref[...], x2_ref[...],
        dimension_numbers=(((1,), (1,)), ((), ())),
        preferred_element_type=jnp.float32)

    # similarity (== y1 @ y2.T for one-hot labels) is a label-equality indicator:
    # a broadcasted VPU compare replaces the (N, num_classes) matmul and its DMA.
    eq = lab_i_ref[...] == lab_j_ref[...]         # (t_i, 1) vs (1, t_j) -> (t_i, t_j)
    sim = eq.astype(jnp.float32)

    # Stable softplus: log(1 + exp(d)) = max(d, 0) + log(1 + exp(-|d|)).
    softplus = jnp.maximum(dot, 0.0) + jnp.log(1.0 + jnp.exp(-jnp.abs(dot)))
    exp_loss = softplus - sim * dot
    dot_loss = dot * (1.0 - sim)

    weight = jnp.where(eq, jnp.float32(class_num), jnp.float32(1.0))
    per_elem = jnp.where(dot > l_threshold, dot_loss, exp_loss) * weight

    # Per-row partial sums, accumulated across the j (reduction) grid axis in the
    # revisited output block; the final (tiny) reduce + divide happens in JAX.
    num_ref[...] += jnp.sum(per_elem, axis=1, keepdims=True)
    den_ref[...] += jnp.sum(weight, axis=1, keepdims=True)


def hash_loss(x, labels, sigmoid_param=1.0, l_threshold=15.0, class_num=1.0):
    """HashNet pairwise loss on hash codes `x` (N, hash_bit) and int labels (N,)."""
    n, hash_bit = x.shape
    half = n // 2
    assert half >= 8 and half % 8 == 0, "pair half must be a multiple of 8"

    target_tile, vmem_cap = _device_defaults()
    t_i, t_j = _pick_tiles(half, target_tile)
    n_i, n_j = half // t_i, half // t_j
    j_off = half // t_j                      # block offset of the second half of x

    labels = labels.astype(jnp.int32)
    lab_i = labels[:half].reshape(half, 1)          # sublane layout (row side)
    lab_j = labels[half:2 * half].reshape(1, half)  # lane layout (column side)

    kernel = functools.partial(
        _hash_loss_kernel,
        sigmoid_param=float(sigmoid_param),
        l_threshold=float(l_threshold),
        class_num=float(class_num),
    )

    # Scheduler hint: per-pair cost is dominated by exp/log (EUP) + masking (VPU),
    # not the tiny-K matmul.
    flops = 2 * half * half * hash_bit + 12 * half * half
    transcendentals = 2 * half * half
    bytes_accessed = (half * hash_bit * 4            # x1 tiles (one fetch per i)
                      + n_i * half * hash_bit * 4    # x2 tiles (re-fetched per i)
                      + 4 * half * 4)                # labels + partial outputs

    vmem_need = 8 * t_i * t_j * 4                    # rough live f32 tile temporaries
    vmem_limit = None
    if vmem_need > 12 * 1024 * 1024:
        vmem_limit = min(vmem_need + 16 * 1024 * 1024, vmem_cap)

    num_part, den_part = pl.pallas_call(
        kernel,
        grid=(n_i, n_j),
        in_specs=[
            # x1 tile: rows [i*t_i, (i+1)*t_i) of the *unsliced* input buffer.
            pl.BlockSpec((t_i, hash_bit), lambda i, j: (i, 0)),
            # x2 tile: rows [half + j*t_j, half + (j+1)*t_j) of the SAME buffer.
            pl.BlockSpec((t_j, hash_bit), lambda i, j: (j_off + j, 0)),
            pl.BlockSpec((t_i, 1), lambda i, j: (i, 0)),
            pl.BlockSpec((1, t_j), lambda i, j: (0, j)),
        ],
        out_specs=[
            pl.BlockSpec((t_i, 1), lambda i, j: (i, 0)),
            pl.BlockSpec((t_i, 1), lambda i, j: (i, 0)),
        ],
        out_shape=[
            jax.ShapeDtypeStruct((half, 1), jnp.float32),
            jax.ShapeDtypeStruct((half, 1), jnp.float32),
        ],
        compiler_params=pltpu.CompilerParams(
            dimension_semantics=("parallel", "arbitrary"),
            vmem_limit_bytes=vmem_limit,
        ),
        cost_estimate=pl.CostEstimate(
            flops=flops,
            transcendentals=transcendentals,
            bytes_accessed=bytes_accessed,
        ),
    )(x, x, lab_i, lab_j)

    return num_part.sum() / den_part.sum()


# --------------------------------------------------------------------------- #
# Pure-JAX references                                                          #
# --------------------------------------------------------------------------- #
def hash_head_ref(feat, w, b, scale=1.0):
    return jnp.tanh(scale * (feat @ w.T + b))


def hash_loss_ref(x, labels, sigmoid_param=1.0, l_threshold=15.0, class_num=1.0):
    half = x.shape[0] // 2
    x1, x2 = x[:half], x[half:2 * half]
    l1, l2 = labels[:half], labels[half:2 * half]
    sim = (l1[:, None] == l2[None, :]).astype(jnp.float32)   # == one-hot y1 @ y2.T
    dot = sigmoid_param * (x1 @ x2.T)
    exp_loss = jnp.log(1.0 + jnp.exp(dot)) - sim * dot
    dot_loss = dot * (1.0 - sim)
    mask_dot = dot > l_threshold
    mask_pos = sim > 0.0
    w = jnp.where(mask_pos, class_num, 1.0)
    num = jnp.sum(jnp.where(mask_dot, dot_loss, exp_loss) * w)
    den = jnp.sum(mask_pos) * class_num + jnp.sum(~mask_pos)
    return num / den


if __name__ == "__main__":
    key = jax.random.PRNGKey(0)
    k1, k2, k3 = jax.random.split(key, 3)

    batch = 16          # pair batch: split into two halves of 8
    in_features = 32    # stand-in for resnet50's 2048-d pooled feature
    n_bit = 32
    num_classes = 8
    scale = 1.0         # module's init_scale (iter_num schedule is host-side state)

    feat = jax.random.normal(k1, (batch, in_features), dtype=jnp.float32)
    w = 0.01 * jax.random.normal(k2, (n_bit, in_features), dtype=jnp.float32)
    b = jnp.zeros((n_bit,), dtype=jnp.float32)
    labels = jax.random.randint(k3, (batch,), 0, num_classes, dtype=jnp.int32)

    # Module forward (hash head): tanh(scale * (feat @ W.T + b)).
    codes = jax.block_until_ready(hash_head(feat, w, b, scale))
    codes_ref = hash_head_ref(feat, w, b, scale)
    assert jnp.allclose(codes, codes_ref, rtol=1e-5, atol=1e-5)

    # HashNet pairwise loss on the codes (tiled Pallas reduction kernel).
    loss = jax.block_until_ready(
        hash_loss(codes, labels, sigmoid_param=1.0, l_threshold=15.0, class_num=1.0))
    ref = hash_loss_ref(codes, labels, 1.0, 15.0, 1.0)
    assert jnp.allclose(loss, ref, rtol=1e-4, atol=1e-5), (loss, ref)

    print("KERNEL_OK")
</pallas_src>

<mosaic_0001>
module attributes {stable_mosaic.version = 11 : i64} {
  func.func @_hash_head_kernel(%arg0: memref<16x32xf32, #tpu.memory_space<vmem>>, %arg1: memref<32x32xf32, #tpu.memory_space<vmem>>, %arg2: memref<1x32xf32, #tpu.memory_space<vmem>>, %arg3: memref<16x32xf32, #tpu.memory_space<vmem>>) attributes {dimension_semantics = [], scalar_prefetch = 0 : i64, scratch_operands = 0 : i64, tpu.core_type = #tpu.core_type<tc>} {
    %c0 = arith.constant 0 : index
    %c0_0 = arith.constant 0 : index
    %0 = vector.load %arg0[%c0, %c0_0] : memref<16x32xf32, #tpu.memory_space<vmem>>, vector<16x32xf32>
    %c0_1 = arith.constant 0 : index
    %c0_2 = arith.constant 0 : index
    %1 = vector.load %arg1[%c0_1, %c0_2] : memref<32x32xf32, #tpu.memory_space<vmem>>, vector<32x32xf32>
    %cst = arith.constant dense<0.000000e+00> : vector<16x32xf32>
    %2 = tpu.matmul %0, %1, %cst {dimension_numbers = #tpu.dot_dimension_numbers<[1], [1], [0], [0], [0, 0, 1, 0], [], []>} : vector<16x32xf32>, vector<32x32xf32>, vector<16x32xf32> -> vector<16x32xf32>
    %c0_3 = arith.constant 0 : index
    %c0_4 = arith.constant 0 : index
    %3 = vector.load %arg2[%c0_3, %c0_4] : memref<1x32xf32, #tpu.memory_space<vmem>>, vector<1x32xf32>
    %4 = vector.broadcast %3 : vector<1x32xf32> to vector<16x32xf32>
    %5 = arith.addf %2, %4 : vector<16x32xf32>
    %cst_5 = arith.constant 1.000000e+00 : f32
    %6 = vector.broadcast %cst_5 : f32 to vector<16x32xf32>
    %7 = arith.mulf %6, %5 : vector<16x32xf32>
    %8 = math.tanh %7 : vector<16x32xf32>
    %c0_6 = arith.constant 0 : index
    %c0_7 = arith.constant 0 : index
    %9 = vector.load %arg3[%c0_6, %c0_7] : memref<16x32xf32, #tpu.memory_space<vmem>>, vector<16x32xf32>
    tpu.vector_store %arg3[%c0_6, %c0_7], %8 {strides = array<i32>} : memref<16x32xf32, #tpu.memory_space<vmem>>, vector<16x32xf32>,
    return
  }
}

</mosaic_0001>

<bundles_post_ra>
// kernel: tpu_custom_call.1
= control target key start
LH: loop header
LB: loop body
LE: loop exit
PB: predicated region body
PF: predicated region fallthrough
CT: control target
= control target key end

     0   :  { %8 = vsyncpa [#allocation3], 0  ;;  %s368_s0 = inlined_call_operand.hbm [shape: f32[16,32], index: 0, kind: input, shape index: {}]   ;;  %s369_s1 = inlined_call_operand.hbm [shape: f32[32,32], index: 1, kind: input, shape index: {}]   ;;  %s370_s2 = inlined_call_operand.vmem [shape: f32[1,32], index: 2, kind: input, shape index: {}]   ;;  %s371_s3 = inlined_call_operand.hbm [shape: f32[16,32], index: 3, kind: output, shape index: {}]  }
   0x1   :  { %9 = vsyncpa [#allocation6], 0 }
   0x2   :  { %10 = vsyncpa [#allocation4], 0  ;;  %s289_s12 = smov [#allocation2]   ;;  %s217_s16 = scalar_lea.hbm %s368_s0, 256 }
   0x3   :  { %s16_s13 = sshll.u32 %s289_s12, 4  ;;  %p218_p0 = scmp.ne.s32.totalorder %s368_s0, %s217_s16  ;;  %s17_s13 = int_to_ptr.vmem [resolvable:$true] %s16_s13 }
   0x4   :  { %p221_p1 = scmp.lt.u32.totalorder %s217_s16, %s368_s0 }
   0x6   :  { %p223_p2 = pnand %p221_p1, %p218_p0 }
   0x8   :  { %226 = shalt.err (!%p223_p2)
}
   0x9   :  { %s227_s21 = scalar_lea.vmem %s17_s13, 256  ;;  %p232_p4 = scmp.lt.s32.totalorder %s17_s13, %s17_s13 }
   0xa   :  { %p228_p3 = scmp.ne.s32.totalorder %s17_s13, %s227_s21  ;;  %p233_p5 = scmp.lt.s32.totalorder %s227_s21, %s227_s21 }
   0xc   :  { %p234_p6 = por %p233_p5, %p232_p4 }
   0xe   :  { %p235_p7 = pnand %p234_p6, %p228_p3 }
  0x10   :  { %238 = shalt.err (!%p235_p7)
}
  0x11   :  { %s290_s22 = smov 128   ;;  %s291_s23 = smov 8  }
  0x12   :  { %22 = dma.hbm_to_vmem [thread:$0]  %s368_s0, 256, %s17_s13, [#allocation3], %s290_s22, %s290_s22, %s291_s23  }
  0x13   :  { %s292_s26 = smov [#allocation5]   ;;  %s239_s30 = scalar_lea.hbm %s369_s1, 512 }
  0x14   :  { %s28_s27 = sshll.u32 %s292_s26, 4  ;;  %p240_p8 = scmp.ne.s32.totalorder %s369_s1, %s239_s30  ;;  %s29_s27 = int_to_ptr.vmem [resolvable:$true] %s28_s27 }
  0x15   :  { %p243_p9 = scmp.lt.u32.totalorder %s239_s30, %s369_s1 }
  0x17   :  { %p245_p10 = pnand %p243_p9, %p240_p8 }
  0x19   :  { %248 = shalt.err (!%p245_p10)
}
  0x1a   :  { %s249_s8 = scalar_lea.vmem %s29_s27, 512  ;;  %p254_p12 = scmp.lt.s32.totalorder %s29_s27, %s29_s27 }
  0x1b   :  { %p250_p11 = scmp.ne.s32.totalorder %s29_s27, %s249_s8  ;;  %p255_p13 = scmp.lt.s32.totalorder %s249_s8, %s249_s8 }
  0x1d   :  { %p256_p0 = por %p255_p13, %p254_p12 }
  0x1f   :  { %p257_p1 = pnand %p256_p0, %p250_p11 }
  0x21   :  { %260 = shalt.err (!%p257_p1)
}
  0x22   :  { %34 = dma.hbm_to_vmem [thread:$0]  %s369_s1, 512, %s29_s27, [#allocation6], %s290_s22, %s290_s22, %s291_s23  }
  0x23   :  { %283 = dma.done.wait [#allocation3], 256  }
  0x24   :  { %284 = vsyncadd [#allocation3], 4294967040 }
  0x25   :  { %285 = dma.done.wait [#allocation6], 512  }
  0x26   :  { %286 = vsyncadd [#allocation6], 4294966784  ;;  %vm56_vm0 = vcmask 261120   ;;  %v45_v0 = vld [vmem:[#allocation5] sm:$0xff]  ;;  %v46_v1 = vld [vmem:[#allocation5 + $0x8] sm:$0xff]  ;;  %s293_s11 = smov [#allocation7]  }
  0x27   :  { %vm197_vm1 = vmpackc.low %vm56_vm0, %vm56_vm0  ;;  %v47_v2 = vld [vmem:[#allocation5 + $0x10] sm:$0xff]  ;;  %v196_v3 = vpack.c.bf16 %v46_v1, %v45_v0  ;;  %v48_v4 = vld [vmem:[#allocation5 + $0x18] sm:$0xff]  ;;  %s159_s12 = sshll.u32 %s293_s11, 4  ;;  %s160_s12 = int_to_ptr.vmem [resolvable:$true] %s159_s12 }
  0x28   :  { %v43_v5 = vld [vmem:[#allocation2] sm:$0xff]  ;;  %v202_v6 = vpack.c.bf16 %v48_v4, %v47_v2  ;;  %v44_v7 = vld [vmem:[#allocation2 + $0x8] sm:$0xff]  ;;  %s261_s13 = scalar_lea.vmem %s160_s12, 256  ;;  %p266_p3 = scmp.lt.s32.totalorder %s160_s12, %s160_s12 }
  0x29   :  { %193 = vmatprep.mubr.msk.f32.mxu0 %vm56_vm0, %v43_v5  ;;  %198 = vmatprep.subr.msk.bf16.mxu0 %vm197_vm1, %v196_v3  ;;  %v172_v8 = vld [vmem:[%s370_s2] ss:$0 sm:$0xff]  ;;  %p262_p2 = scmp.ne.s32.totalorder %s160_s12, %s261_s13  ;;  %p267_p4 = scmp.lt.s32.totalorder %s261_s13, %s261_s13 }
  0x2a   :  { %201 = vmatpush3.bf16.xpose.msk.msra.mxu0 %vm197_vm1, %v196_v3 }
  0x2b   :  { %204 = vmatprep.subr.msk.bf16.mxu0 %vm197_vm1, %v202_v6  ;;  %p268_p5 = por %p267_p4, %p266_p3 }
  0x2d   :  { %p269_p6 = pnand %p268_p5, %p262_p2 }
  0x32   :  { %207 = vmatpush3.bf16.xpose.msk.msra.mxu0 %vm197_vm1, %v202_v6 }
  0x39   :  { %194 = vmatmul.mubr.msk.f32.vlgmr.msra.gmra.mrb[0].mxu0 %vm56_vm0, %v44_v7 }
 0x10c   :  { %v195_v9 = vpop.f32.mrb[0].mxu0 }
 0x10d   :  { %v147_v10 = vadd.f32 %v195_v9, %v172_v8  ;;  %v141_v11 = vpop.f32.mrb[1].mxu0 }
 0x10e   :  { %v142_v12 = vadd.f32 %v172_v8, %v141_v11 }
 0x10f   :  { %213 = vtanh.f32 %v147_v10 }
 0x110   :  { %215 = vtanh.f32 %v142_v12 }
 0x119   :  { %v214_v13 = vpop.eup %213 }
 0x11a   :  { %v216_v14 = vpop.eup %215  ;;  %153 = vst.msk [vmem:[#allocation7 + $0x8] sm:$0xff] %vm56_vm0, %v214_v13 }
 0x11b   :  { %152 = vst.msk [vmem:[#allocation7] sm:$0xff] %vm56_vm0, %v216_v14 }
 0x11c   :  { %272 = shalt.err (!%p269_p6)
}
 0x11d   :  { %s273_s15 = scalar_lea.hbm %s371_s3, 256 }
 0x11e   :  { %p274_p7 = scmp.ne.s32.totalorder %s371_s3, %s273_s15  ;;  %p277_p8 = scmp.lt.u32.totalorder %s273_s15, %s371_s3 }
 0x120   :  { %p279_p9 = pnand %p277_p8, %p274_p7 }
 0x122   :  { %282 = shalt.err (!%p279_p9)
}
 0x123   :  { %165 = dma.vmem_to_hbm [thread:$0]  %s160_s12, 256, %s371_s3, [#allocation4], %s290_s22, %s290_s22, %s291_s23  }
 0x124   :  { %287 = dma.done.wait [#allocation4], 256  }
 0x125   :  { %288 = vsyncadd [#allocation4], 4294967040 }
 0x126   :  { %169 = vsyncpa [#allocation3], 1 }
 0x127   :  { %170 = vsyncpa [#allocation6], 1 }
 0x128   :  { %171 = vsyncpa [#allocation4], 1 }

</bundles_post_ra>
